<compile_context>
chip_gen: v5e
topology: v5e:2x2
jax: 0.10.0
libtpu: 0.0.40
codegen_flags: <defaults>
</compile_context>

<pallas_src>
import functools

import jax
import jax.numpy as jnp
from jax.experimental import pallas as pl
from jax.experimental.pallas import tpu as pltpu

EPS = 1e-6


def _round_up(n, m):
    return ((n + m - 1) // m) * m


def _residual_kernel(gamma_ref, beta_ref, x_ref, w_ref, b_ref, o_ref, nx_ref,
                     *, tn, n_col):
    # gamma_ref/beta_ref: (1,) scalars in SMEM
    # x_ref : (TR, D)  full-width row tile (LayerNorm input + residual source)
    # w_ref : (D, TN)  sublayer weight column tile (bf16)
    # b_ref : (1, TN)  sublayer bias column tile
    # o_ref : (TR, TN) output tile
    # nx_ref: (TR, D)  bf16 scratch holding LayerNorm(x) for the current row tile
    j = pl.program_id(1)

    # LayerNorm (+ bf16 cast) hoisted: done once per row tile, reused for all j.
    @pl.when(j == 0)
    def _():
        x = x_ref[...].astype(jnp.float32)
        d = x.shape[-1]
        mean = jnp.mean(x, axis=-1, keepdims=True)
        centered = x - mean
        # torch.std default: unbiased (divisor N-1).  Degenerate for D == 1;
        # constant rows give std == 0 -> inv ~ 1/eps, but centered == 0 so the
        # result stays finite (matches the PyTorch module's behaviour).
        var_unbiased = jnp.sum(centered * centered, axis=-1, keepdims=True) / (d - 1)
        inv = pl.reciprocal(jnp.sqrt(var_unbiased) + EPS, approx=True)  # EUP slot
        scale = gamma_ref[0] * inv          # fold gamma into the (TR,1) scale
        nx = centered * scale + beta_ref[0]
        nx_ref[...] = nx.astype(nx_ref.dtype)

    # Sublayer Linear(D -> D) on the MXU: bf16 operands, f32 accumulation.
    y = jnp.dot(nx_ref[...], w_ref[...], preferred_element_type=jnp.float32)
    y = y + b_ref[...].astype(jnp.float32)

    # Dropout in eval mode is identity; residual add from the resident x tile.
    if n_col == 1:
        xc = x_ref[...]
    else:
        start = pl.multiple_of(j * tn, 128)   # tn % 128 == 0 whenever n_col > 1
        xc = x_ref[:, pl.ds(start, tn)]
    o_ref[...] = (xc.astype(jnp.float32) + y).astype(o_ref.dtype)


def _pick_col_tile(D, col_tile):
    # Keep W fully resident when a bf16 buffer is small (<= 8 MiB <=> D <= 2048):
    # double-buffered it is still only 16 MiB, fine even on v7x (64 MiB VMEM).
    if D * D * 2 <= 8 * 1024 * 1024:
        return D
    if D % 128 == 0:
        # Largest divisor of D that is a multiple of 128 and <= col_tile.
        best = 128
        for cand in range(128, min(col_tile, D) + 1, 128):
            if D % cand == 0:
                best = cand
        return best
    # Awkward D (not a multiple of 128): fall back to full width (correct, rare).
    return D


def residual_connection(x, w, b, gamma, beta, *,
                        row_tile=512, col_tile=512,
                        matmul_dtype=jnp.bfloat16):
    """x: [B, S, D] float32. Returns x + Linear(LayerNorm(x)) (dropout = eval)."""
    B, S, D = x.shape
    R = B * S

    # Row tiling: clamp to the problem size, keep a multiple of 8 (f32 sublane).
    tr = _round_up(min(row_tile, _round_up(R, 8)), 8)
    # Guarantee >= 2 row tiles when possible so the "parallel" row axis can be
    # sharded across v7x's two TensorCores.
    if _round_up(R, tr) // tr < 2 and R > 8:
        tr = _round_up(-(-R // 2), 8)
    R_pad = _round_up(R, tr)

    x2 = x.reshape(R, D)
    if R_pad != R:
        x2 = jnp.pad(x2, ((0, R_pad - R), (0, 0)))

    # Column tiling of W (bounds the resident weight slab on large D).
    tn = _pick_col_tile(D, col_tile)
    n_col = D // tn

    w_c = w.astype(matmul_dtype)
    b2 = b.reshape(1, D)

    kernel = functools.partial(_residual_kernel, tn=tn, n_col=n_col)
    grid = (R_pad // tr, n_col)

    out = pl.pallas_call(
        kernel,
        out_shape=jax.ShapeDtypeStruct((R_pad, D), x.dtype),
        grid_spec=pltpu.PrefetchScalarGridSpec(
            num_scalar_prefetch=0,
            grid=grid,
            in_specs=[
                pl.BlockSpec(memory_space=pltpu.MemorySpace.SMEM),   # gamma (1,)
                pl.BlockSpec(memory_space=pltpu.MemorySpace.SMEM),   # beta  (1,)
                pl.BlockSpec((tr, D), lambda i, j: (i, 0)),          # x row tile (LN + residual)
                pl.BlockSpec((D, tn), lambda i, j: (0, j)),          # W column tile
                pl.BlockSpec((1, tn), lambda i, j: (0, j)),          # bias column tile
            ],
            out_specs=pl.BlockSpec((tr, tn), lambda i, j: (i, j)),
            scratch_shapes=[pltpu.VMEM((tr, D), matmul_dtype)],      # LN output, reused over j
        ),
        compiler_params=pltpu.CompilerParams(
            dimension_semantics=("parallel", "arbitrary"),
            vmem_limit_bytes=48 * 1024 * 1024),
    )(gamma, beta, x2, w_c, b2)

    return out[:R].reshape(B, S, D)


def reference(x, w, b, gamma, beta):
    mean = jnp.mean(x, axis=-1, keepdims=True)
    std = jnp.std(x, axis=-1, keepdims=True, ddof=1)   # unbiased, like torch.std
    nx = gamma[0] * (x - mean) / (std + EPS) + beta[0]
    y = nx @ w + b
    return x + y


if __name__ == "__main__":
    # Small but lane-dense demo shape (D multiple of 128 avoids masked stores).
    B, S, D = 2, 8, 128
    key = jax.random.PRNGKey(0)
    kx, kw, kb = jax.random.split(key, 3)

    x = jax.random.normal(kx, (B, S, D), dtype=jnp.float32)

    # Deterministic synthetic sublayer parameters (Linear D -> D).
    w = jax.random.normal(kw, (D, D), dtype=jnp.float32) * (1.0 / jnp.sqrt(D))
    b = jax.random.normal(kb, (D,), dtype=jnp.float32) * 0.02

    # LayerNormalization params: nn.Parameter(torch.ones(1)) for both.
    gamma = jnp.ones((1,), dtype=jnp.float32)
    beta = jnp.ones((1,), dtype=jnp.float32)

    out = residual_connection(x, w, b, gamma, beta)
    out = jax.block_until_ready(out)

    ref = reference(x, w, b, gamma, beta)
    assert out.shape == (B, S, D)
    # Tolerance loosened vs pure-f32: bf16 MXU operands + EUP approx reciprocal.
    assert jnp.allclose(out, ref, atol=5e-2, rtol=5e-2), "mismatch vs reference"

    print("KERNEL_OK")
</pallas_src>

<mosaic_0001>
module attributes {stable_mosaic.version = 11 : i64} {
  func.func @_residual_kernel(%arg0: i32, %arg1: i32, %arg2: memref<1xf32, #tpu.memory_space<smem>>, %arg3: memref<1xf32, #tpu.memory_space<smem>>, %arg4: memref<8x128xf32, #tpu.memory_space<vmem>>, %arg5: memref<128x128xbf16, #tpu.memory_space<vmem>>, %arg6: memref<1x128xf32, #tpu.memory_space<vmem>>, %arg7: memref<8x128xf32, #tpu.memory_space<vmem>>, %arg8: memref<8x128xbf16, #tpu.memory_space<vmem>>) attributes {dimension_semantics = [#tpu.dimension_semantics<parallel>, #tpu.dimension_semantics<arbitrary>], iteration_bounds = array<i64: 2, 1>, scalar_prefetch = 0 : i64, scratch_operands = 1 : i64, tpu.core_type = #tpu.core_type<tc>, window_params = [{transform_indices = @transform_0, window_bounds = array<i64: 1>}, {transform_indices = @transform_1, window_bounds = array<i64: 1>}, {transform_indices = @transform_2, window_bounds = array<i64: 8, 128>}, {transform_indices = @transform_3, window_bounds = array<i64: 128, 128>}, {transform_indices = @transform_4, window_bounds = array<i64: 1, 128>}, {transform_indices = @transform_5, window_bounds = array<i64: 8, 128>}]} {
    %c0_i32 = arith.constant 0 : i32
    %0 = arith.cmpi eq, %arg1, %c0_i32 : i32
    %1 = arith.extui %0 : i1 to i32
    %c0_i32_0 = arith.constant 0 : i32
    %2 = arith.cmpi ne, %1, %c0_i32_0 : i32
    scf.if %2 {
      %c0_10 = arith.constant 0 : index
      %c0_11 = arith.constant 0 : index
      %12 = vector.load %arg4[%c0_10, %c0_11] : memref<8x128xf32, #tpu.memory_space<vmem>>, vector<8x128xf32>
      %cst_12 = arith.constant dense<0.000000e+00> : vector<8xf32>
      %13 = vector.multi_reduction <add>, %12, %cst_12 [1] : vector<8x128xf32> to vector<8xf32>
      %14 = vector.shape_cast %13 : vector<8xf32> to vector<8x1xf32>
      %cst_13 = arith.constant 1.280000e+02 : f32
      %15 = vector.broadcast %cst_13 : f32 to vector<8x1xf32>
      %16 = arith.divf %14, %15 : vector<8x1xf32>
      %17 = vector.broadcast %16 : vector<8x1xf32> to vector<8x128xf32>
      %18 = arith.subf %12, %17 : vector<8x128xf32>
      %19 = arith.mulf %18, %18 : vector<8x128xf32>
      %cst_14 = arith.constant dense<0.000000e+00> : vector<8xf32>
      %20 = vector.multi_reduction <add>, %19, %cst_14 [1] : vector<8x128xf32> to vector<8xf32>
      %21 = vector.shape_cast %20 : vector<8xf32> to vector<8x1xf32>
      %cst_15 = arith.constant 1.270000e+02 : f32
      %22 = vector.broadcast %cst_15 : f32 to vector<8x1xf32>
      %23 = arith.divf %21, %22 : vector<8x1xf32>
      %24 = math.sqrt %23 : vector<8x1xf32>
      %cst_16 = arith.constant 9.99999997E-7 : f32
      %25 = vector.broadcast %cst_16 : f32 to vector<8x1xf32>
      %26 = arith.addf %24, %25 : vector<8x1xf32>
      %27 = tpu.reciprocal %26 {approx = true} : vector<8x1xf32> -> vector<8x1xf32>
      %c0_17 = arith.constant 0 : index
      %28 = memref.load %arg2[%c0_17] : memref<1xf32, #tpu.memory_space<smem>>
      %29 = vector.broadcast %28 : f32 to vector<8x1xf32>
      %30 = arith.mulf %29, %27 : vector<8x1xf32>
      %31 = vector.broadcast %30 : vector<8x1xf32> to vector<8x128xf32>
      %32 = arith.mulf %18, %31 : vector<8x128xf32>
      %c0_18 = arith.constant 0 : index
      %33 = memref.load %arg3[%c0_18] : memref<1xf32, #tpu.memory_space<smem>>
      %34 = vector.broadcast %33 : f32 to vector<8x128xf32>
      %35 = arith.addf %32, %34 : vector<8x128xf32>
      %36 = arith.truncf %35 : vector<8x128xf32> to vector<8x128xbf16>
      %c0_19 = arith.constant 0 : index
      %c0_20 = arith.constant 0 : index
      %37 = vector.load %arg8[%c0_19, %c0_20] : memref<8x128xbf16, #tpu.memory_space<vmem>>, vector<8x128xbf16>
      tpu.vector_store %arg8[%c0_19, %c0_20], %36 {strides = array<i32>} : memref<8x128xbf16, #tpu.memory_space<vmem>>, vector<8x128xbf16>,
    } else {
    }
    %c0 = arith.constant 0 : index
    %c0_1 = arith.constant 0 : index
    %3 = vector.load %arg8[%c0, %c0_1] : memref<8x128xbf16, #tpu.memory_space<vmem>>, vector<8x128xbf16>
    %c0_2 = arith.constant 0 : index
    %c0_3 = arith.constant 0 : index
    %4 = vector.load %arg5[%c0_2, %c0_3] : memref<128x128xbf16, #tpu.memory_space<vmem>>, vector<128x128xbf16>
    %cst = arith.constant dense<0.000000e+00> : vector<8x128xf32>
    %5 = tpu.matmul %3, %4, %cst {dimension_numbers = #tpu.dot_dimension_numbers<[1], [0], [0], [1], [0, 0, 1, 1], [], []>} : vector<8x128xbf16>, vector<128x128xbf16>, vector<8x128xf32> -> vector<8x128xf32>
    %c0_4 = arith.constant 0 : index
    %c0_5 = arith.constant 0 : index
    %6 = vector.load %arg6[%c0_4, %c0_5] : memref<1x128xf32, #tpu.memory_space<vmem>>, vector<1x128xf32>
    %7 = vector.broadcast %6 : vector<1x128xf32> to vector<8x128xf32>
    %8 = arith.addf %5, %7 : vector<8x128xf32>
    %c0_6 = arith.constant 0 : index
    %c0_7 = arith.constant 0 : index
    %9 = vector.load %arg4[%c0_6, %c0_7] : memref<8x128xf32, #tpu.memory_space<vmem>>, vector<8x128xf32>
    %10 = arith.addf %9, %8 : vector<8x128xf32>
    %c0_8 = arith.constant 0 : index
    %c0_9 = arith.constant 0 : index
    %11 = vector.load %arg7[%c0_8, %c0_9] : memref<8x128xf32, #tpu.memory_space<vmem>>, vector<8x128xf32>
    tpu.vector_store %arg7[%c0_8, %c0_9], %10 {strides = array<i32>} : memref<8x128xf32, #tpu.memory_space<vmem>>, vector<8x128xf32>,
    return
  }
  func.func @transform_0(%arg0: i32, %arg1: i32) -> i32 {
    %c0_i32 = arith.constant 0 : i32
    %c0_i32_0 = arith.constant 0 : i32
    return %c0_i32 : i32
  }
  func.func @transform_1(%arg0: i32, %arg1: i32) -> i32 {
    %c0_i32 = arith.constant 0 : i32
    %c0_i32_0 = arith.constant 0 : i32
    return %c0_i32 : i32
  }
  func.func @transform_2(%arg0: i32, %arg1: i32) -> (i32, i32) {
    %c0_i32 = arith.constant 0 : i32
    %c0_i32_0 = arith.constant 0 : i32
    return %arg0, %c0_i32 : i32, i32
  }
  func.func @transform_3(%arg0: i32, %arg1: i32) -> (i32, i32) {
    %c0_i32 = arith.constant 0 : i32
    %c0_i32_0 = arith.constant 0 : i32
    return %c0_i32, %arg1 : i32, i32
  }
  func.func @transform_4(%arg0: i32, %arg1: i32) -> (i32, i32) {
    %c0_i32 = arith.constant 0 : i32
    %c0_i32_0 = arith.constant 0 : i32
    return %c0_i32, %arg1 : i32, i32
  }
  func.func @transform_5(%arg0: i32, %arg1: i32) -> (i32, i32) {
    %c0_i32 = arith.constant 0 : i32
    return %arg0, %arg1 : i32, i32
  }
}

</mosaic_0001>

<bundles_post_ra>
// kernel: tpu_custom_call.1
= control target key start
LH: loop header
LB: loop body
LE: loop exit
PB: predicated region body
PF: predicated region fallthrough
CT: control target
= control target key end

     0   :  { %s1037_s0 = inlined_call_operand.<no memory space> [shape: f32[1], index: 0, kind: input, shape index: {}]   ;;  %s1038_s1 = inlined_call_operand.<no memory space> [shape: f32[1], index: 1, kind: input, shape index: {}]   ;;  %s1039_s2 = inlined_call_operand.hbm [shape: f32[16,128], index: 2, kind: input, shape index: {}]   ;;  %s1040_s3 = inlined_call_operand.hbm [shape: bf16[128,128], index: 3, kind: input, shape index: {}]   ;;  %s1041_s4 = inlined_call_operand.vmem [shape: f32[1,128], index: 4, kind: input, shape index: {}]   ;;  %s1042_s5 = inlined_call_operand.hbm [shape: f32[16,128], index: 5, kind: output, shape index: {}]  }
   0x1   :  { %10 = sst [smem:[#allocation3]] %s1037_s0 }
   0x2   :  { %11 = sst [smem:[#allocation4]] %s1038_s1 }
   0x3   :  { %12 = vsyncpa [#allocation6], 0 }
   0x4   :  { %14 = vsyncpa [#allocation6 + $0x1], 0 }
   0x5   :  { %15 = vsyncpa [#allocation9], 0 }
   0x6   :  { %16 = vsyncpa [#allocation7], 0 }
   0x7   :  { %18 = vsyncpa [#allocation7 + $0x1], 0  ;;  %s882_s22 = smov 0   ;;  %s884_s23 = smov 0  }
   0x8   :  { %s886_s24 = smov 0   ;;  %s888_s25 = smov 0  }
   0x9   :  { %s890_s26 = smov 0   ;;  %s892_s0 = smov 0  }
   0xa LB: > { %s551_s1 = sadd.s32 4294967295, %s839_s0   ;;  %p553_p0 = scmp.ge.s32.totalorder %s839_s0, 1  ;;  %s839_s0 = sphi %s892_s0, %s24_s0   ;;  %s835_s26 = sphi %s890_s26, %s1053_s26   ;;  %s831_s25 = sphi %s888_s25, %s1052_s25   ;;  %s827_s24 = sphi %s886_s24, %s1051_s24   ;;  %s823_s23 = sphi %s884_s23, %s1050_s23   ;;  %s819_s22 = sphi %s882_s22, %s1049_s22  }
   0xb   : > { %p914_p1 = scmp.eq.s32.totalorder %s551_s1, 0  ;;  %p189_p2 = scmp.lt.s32.totalorder %s839_s0, 3 }
   0xc   : > { %s208_s30 = sshll.u32 %s1040_s3, 4  ;;  %s841_s7 = smov [#allocation8]   ;;  %s209_s30 = int_to_ptr.hbm [resolvable:$true] %s208_s30 }
   0xd   : > { %p922_p3 = pnand %p553_p0, %p189_p2  ;;  %s210_s8 = sshll.u32 %s841_s7, 4  ;;  %s211_s8 = int_to_ptr.vmem [resolvable:$true] %s210_s8 }
   0xe   : > { %p556_p6 = scmp.ge.s32.totalorder %s839_s0, 2  ;;  %s842_s9 = smov 64  }
   0xf   : > { %p615_p4 = pneg %p922_p3  ;;  %s843_s10 = smov 4  }
  0x10   : > { %s552_s11 = sadd.s32 4294967294, %s839_s0   ;;  %s36_s12 = sadd.s32 1, %s835_s26 }
  0x11   : > { %p616_p5 = pnand %p615_p4, %p914_p1  ;;  %s85_s13 = sadd.s32 1, %s827_s24 }
  0x12   : > { %p38_p7 = scmp.ge.s32.totalorder %s36_s12, 2  ;;  %p92_p8 = scmp.ne.s32.totalorder %s827_s24, %s823_s23 }
  0x13   : > { %618 = dma.hbm_to_vmem [thread:$0]  (!%p616_p5), %s209_s30, 1024, %s211_s8, [#allocation9], %s842_s9, %s842_s9, %s843_s10  }
  0x14   : > { %p93_p9 = scmp.eq.s32.totalorder %s839_s0, 0  ;;  %p98_p10 = scmp.ne.s32.totalorder %s823_s23, %s819_s22 }
  0x15   : > { %s1055_s12 = smov (%p38_p7, %s36_s12), 0  ;;  %p176_p13 = scmp.eq.s32.totalorder %s551_s1, 1 }
  0x16   : > { %p941_p11 = por %p93_p9, %p92_p8  ;;  %p947_p12 = por %p914_p1, %p98_p10 }
  0x17   : > { %s82_s16 = ssub.s32 %s835_s26, %s1055_s12  ;;  %p182_p2 = scmp.eq.s32.totalorder %s552_s11, 1 }
  0x18   : > { %p83_p0 = scmp.eq.s32.totalorder %s82_s16, 0  ;;  %p953_p4 = por %p176_p13, %p92_p8 }
  0x19   : > { %p628_p5 = scmp.lt.s32.totalorder %s839_s0, 2  ;;  %p961_p7 = por %p182_p2, %p98_p10 }
  0x1a   : > { %s959_s18 = scalar_select %p83_p0, %s827_s24, %s85_s13  }
  0x1b   : > { %s230_s20 = sand.u32 1, %s827_s24   ;;  %s558_s28 = sshll.u32 %s835_s26, 3 }
  0x1c   : > { %s557_s21 = sshll.u32 %s230_s20, 3  ;;  %s238_s1 = scalar_lea.hbm %s1039_s2, %s558_s28 }
  0x1d   : > { %s234_s7 = scalar_lea.vmem [#allocation5], %s557_s21  ;;  %s240_s9 = sshll.u32 %s238_s1, 4  ;;  %s241_s9 = int_to_ptr.hbm [resolvable:$true] %s240_s9 }
  0x1e   : > { %s242_s8 = sshll.u32 %s234_s7, 4  ;;  %p620_p8 = pnand %p628_p5, %p941_p11  ;;  %s243_s8 = int_to_ptr.vmem [resolvable:$true] %s242_s8 }
  0x1f   : > { %s231_s10 = scalar_lea.sflag [#allocation6], %s230_s20  ;;  %251 = sbr.rel (%p922_p3) target bundleno = 460 (0x1cc), region = 40 }
  0x20   : > { %622 = dma.hbm_to_vmem [thread:$0]  (!%p620_p8), %s241_s9, 128, %s243_s8, %s231_s10  }
  0x21   : > { %s975_s11 = sand.u32 (!%p922_p3), 1, %s823_s23  }
  0x22   : > { %s560_s13 = sshll.u32 (!%p922_p3), %s975_s11, 3  ;;  %s254_s16 = scalar_lea.sflag (!%p922_p3), [#allocation6], %s975_s11 }
  0x23   : > { %s257_s21 = scalar_lea.vmem (!%p922_p3), [#allocation5], %s560_s13 }
  0x24   : > { %806 = dma.done.wait (%p947_p12), %s254_s16, 128  }
  0x25   : > { %808 = vsyncadd (%p947_p12), %s254_s16, 4294967168 }
  0x26   : > { %810 = dma.done.wait (%p914_p1), [#allocation9], 1024  }
  0x27   : > { %812 = vsyncadd (%p914_p1), [#allocation9], 4294966272  ;;  %v989_v0 = vld [vmem:[%s257_s21] sm:$0xff]  ;;  %v844_v1 = vmov 128.0   ;;  %v845_v12 = vmov 127.0   ;;  %v604_v19 = vld [vmem:[#allocation8 + $0x28] sm:$0xff] }
  0x28   : > { %301 = vadd.xlane.f32.xlu0 %v989_v0  ;;  %685 = vrcp.f32 %v844_v1  ;;  %v606_v15 = vld [vmem:[#allocation8 + $0x38] sm:$0xff]  ;;  %v605_v17 = vld [vmem:[#allocation8 + $0x30] sm:$0xff]  ;;  %v603_v21 = vld [vmem:[#allocation8 + $0x20] sm:$0xff]  ;;  %s337_s27 = sld [smem:[#allocation3]]  ;;  %s596_s14 = sshll.u32 %s831_s25, 3 }
  0x29   : > { %687 = vrcp.f32 %v845_v12  ;;  %415 = vmatpush.bf16.msra.mxu0 %v606_v15  ;;  %v602_v24 = vld [vmem:[#allocation8 + $0x18] sm:$0xff]  ;;  %v601_v26 = vld [vmem:[#allocation8 + $0x10] sm:$0xff]  ;;  %v600_v27 = vld [vmem:[#allocation8 + $0x8] sm:$0xff]  ;;  %s341_s6 = sld [smem:[#allocation4]]  ;;  %s443_s30 = scalar_lea.hbm %s1042_s5, %s596_s14 }
  0x2a   : > { %v599_v30 = vld [vmem:[#allocation8] sm:$0xff]  ;;  %v684_v48 = vld [vmem:[%s1041_s4] ss:$0 sm:$0xff]  ;;  %s292_s1 = scalar_lea.vmem [#allocation10], %s560_s13  ;;  %s447_s8 = sshll.u32 %s443_s30, 4  ;;  %s448_s8 = int_to_ptr.hbm [resolvable:$true] %s447_s8 }
  0x2b   : > { %s445_s7 = sshll.u32 %s292_s1, 4  ;;  %s432_s25 = scalar_lea.sflag [#allocation7], %s975_s11  ;;  %s446_s7 = int_to_ptr.vmem [resolvable:$true] %s445_s7 }
  0x2c   : > { %s767_s9 = sshra.s32 %s448_s8, 4  ;;  %s773_s13 = scalar_lea.hbm %s1042_s5, 16  ;;  %s768_s9 = int_to_ptr.hbm [resolvable:$true] %s767_s9 }
  0x2d   : > { %416 = vmatpush.bf16.msra.mxu0 %v605_v17  ;;  %s769_s10 = scalar_lea.hbm %s768_s9, 8  ;;  %p774_p10 = scmp.lt.s32.totalorder %s768_s9, %s1042_s5 }
  0x2e   : > { %v686_v2 = vpop.eup %685  ;;  %v338_v40 = vstv %s337_s27  ;;  %p770_p1 = scmp.ne.s32.totalorder %s768_s9, %s769_s10  ;;  %p775_p11 = scmp.lt.s32.totalorder %s773_s13, %s769_s10 }
  0x2f   : > { %v304_v3 = vmul.f32 128.0, %v686_v2  ;;  %vm308_vm0 = vweird.f32 %v686_v2  ;;  %v688_v13 = vpop.eup %687  ;;  %v342_v43 = vstv %s341_s6 }
  0x30   : > { %v316_v14 = vmul.f32 127.0, %v688_v13  ;;  %vm320_vm1 = vweird.f32 %v688_v13  ;;  %p771_p3 = pnand %p770_p1, %p953_p4  ;;  %p776_p12 = por %p775_p11, %p774_p10 }
  0x31   : > { %v305_v4 = vsub.f32 1.0, %v304_v3  ;;  %417 = vmatpush.bf16.msra.mxu0 %v604_v19 }
  0x32   : > { %v317_v16 = vsub.f32 1.0, %v316_v14  ;;  %p772_p9 = pneg %p771_p3 }
  0x33   : > { %v306_v5 = vmul.f32 %v686_v2, %v305_v4 }
  0x34   : > { %v318_v18 = vmul.f32 %v688_v13, %v317_v16  ;;  %p777_p13 = pnand %p776_p12, %p772_p9 }
  0x35   : > { %v307_v6 = vadd.f32 %v686_v2, %v306_v5  ;;  %418 = vmatpush.bf16.msra.mxu0 %v603_v21 }
  0x36   : > { %v319_v20 = vadd.f32 %v688_v13, %v318_v18 }
  0x37   : > { %v309_v7 = vsel %vm308_vm0, %v686_v2, %v307_v6 }
  0x38   : > { %v321_v22 = vsel %vm320_vm1, %v688_v13, %v319_v20 }
  0x39   : > { %419 = vmatpush.bf16.msra.mxu0 %v602_v24 }
  0x3d   : > { %420 = vmatpush.bf16.msra.mxu0 %v601_v26 }
  0x41   : > { %421 = vmatpush.bf16.msra.mxu0 %v600_v27 }
  0x45   : > { %422 = vmatpush.bf16.msra.mxu0 %v599_v30 }
  0x9b   : > { %v302_v8 = vpop.xlane.xlu0 %301 }
  0x9c   : > { %v310_v9 = vmul.f32 %v309_v7, %v302_v8 }
  0x9e   : > { %v311_v10 = vsub.f32 %v989_v0, %v310_v9 }
  0xa0   : > { %v312_v11 = vmul.f32 %v311_v10, %v311_v10 }
  0xa2   : > { %313 = vadd.xlane.f32.xlu0 %v312_v11 }
 0x115   : > { %v314_v23 = vpop.xlane.xlu0 %313 }
 0x116   : > { %v322_v25 = vmul.f32 %v321_v22, %v314_v23 }
 0x118   : > { %689 = vrsqrt.f32 %v322_v25  ;;  %vm330_vm2 = vcmp.eq.f32.partialorder %v322_v25, inf  ;;  %v333_v36 = vand.u32 2147483648, %v322_v25  ;;  %vm332_vm3 = vcmp.eq.f32.partialorder %v322_v25, 0.0 }
 0x11e   : > { %v690_v28 = vpop.eup %689 }
 0x11f   : > { %v324_v29 = vmul.f32 %v690_v28, %v322_v25 }
 0x121   : > { %v325_v31 = vmul.f32 %v690_v28, %v324_v29 }
 0x123   : > { %v326_v32 = vmul.f32 0.5, %v325_v31 }
 0x125   : > { %v327_v33 = vsub.f32 1.5, %v326_v32 }
 0x127   : > { %v328_v34 = vmul.f32 %v690_v28, %v327_v33 }
 0x129   : > { %v329_v35 = vmul.f32 %v328_v34, %v322_v25 }
 0x12b   : > { %v331_v37 = vsel %vm330_vm2, %v322_v25, %v329_v35 }
 0x12c   : > { %v334_v38 = vsel %vm332_vm3, %v333_v36, %v331_v37 }
 0x12d   : > { %v335_v39 = vadd.f32 1e-06, %v334_v38 }
 0x12f   : > { %691 = vrcp.f32 %v335_v39 }
 0x135   : > { %v692_v41 = vpop.eup %691 }
 0x136   : > { %v339_v42 = vmul.f32 %v692_v41, %v338_v40 }
 0x138   : > { %v340_v44 = vmul.f32 %v339_v42, %v311_v10 }
 0x13a   : > { %v343_v45 = vadd.f32 %v342_v43, %v340_v44 }
 0x13c   : > { %v344_v46 = vpack.c.bf16 %v343_v45, %v343_v45 }
 0x13e   : > { %345 = vst [vmem:[#allocation2] sm:$0xf] %v344_v46 }
 0x145   : > { %v346_v47 = vld [vmem:[#allocation2] sm:$0xf] }
 0x146   : > { %423 = vmatmul.bf16.vlgmr.msra.gmra.mxu0 %v346_v47 }
 0x1c3   : > { %v424_v49 = vpop.f32.mrf.mxu0 }
 0x1c4   : > { %v425_v50 = vadd.f32 %v684_v48, %v424_v49 }
 0x1c6   : > { %v429_v51 = vadd.f32 %v425_v50, %v989_v0 }
 0x1c8   : > { %430 = vst [vmem:[%s292_s1] sm:$0xff] %v429_v51 }
 0x1c9   : > { %780 = shalt.err (!%p777_p13)
}
 0x1ca   : > { %613 = dma.vmem_to_hbm [thread:$0]  (%p953_p4), %s446_s7, 128, %s448_s8, %s432_s25  }
 0x1cb   : > { %v426_v52 = vpop.f32.mrf.mxu0 }
 0x1cc PF: > { %s459_s11 = sand.u32 1, %s819_s22   ;;  %p624_p0 = pnand %p556_p6, %p961_p7 }
 0x1cd   : > { %s460_s14 = scalar_lea.sflag [#allocation7], %s459_s11 }
 0x1ce   : > { %p625_p2 = pneg %p624_p0 }
 0x1d0   : > { %814 = dma.done.wait (%p625_p2), %s460_s14, 128  }
 0x1d1   : > { %816 = vsyncadd (%p625_p2), %s460_s14, 4294967168  ;;  %s24_s0 = sadd.s32 1, %s839_s0   ;;  %s1049_s22 = smov %s823_s23 }
 0x1d2   : > { %p21_p5 = scmp.ge.s32.totalorder %s24_s0, 4   ;;  %s1050_s23 = smov %s827_s24 }
 0x1d3   : > { %s1051_s24 = smov %s959_s18  ;;  %s1052_s25 = smov %s835_s26 }
 0x1d4   : > { %s1053_s26 = smov %s1055_s12  ;;  %23 = sbr.rel (!%p21_p5) target bundleno = 10 (0xa), region = 97 }
 0x1d9   :  { %466 = vsyncpa [#allocation6], 1 }
 0x1da   :  { %468 = vsyncpa [#allocation6 + $0x1], 1 }
 0x1db   :  { %469 = vsyncpa [#allocation9], 1 }
 0x1dc   :  { %470 = vsyncpa [#allocation7], 1 }
 0x1dd   :  { %472 = vsyncpa [#allocation7 + $0x1], 1 }

</bundles_post_ra>
